<compile_context>
chip_gen: v7x
topology: tpu7x:2x2x1
jax: 0.10.0
libtpu: 0.0.40
codegen_flags: <defaults>
</compile_context>

<pallas_src>
import functools

import jax
import jax.numpy as jnp
from jax.experimental import pallas as pl
from jax.experimental.pallas import tpu as pltpu

_LANE = 128     # vreg lane width
_SUBLANE = 8    # vreg sublane count (f32)


def _round_up(v, m):
    return ((v + m - 1) // m) * m


def _actor2_kernel(x_ref, w1_ref, b1_ref, w2_ref, b2_ref, out_ref,
                   *, act_lo, act_hi, apply_clip):
    # x arrives as f32 straight from HBM; cast to the MXU compute dtype here
    # (free VPU work hidden under the x DMA).
    x = x_ref[...].astype(w1_ref.dtype)

    # fc1 + ReLU: bf16 operands, f32 MXU accumulation, f32 bias/ReLU.
    h = jnp.dot(x, w1_ref[...], preferred_element_type=jnp.float32)
    h = jnp.maximum(h + b1_ref[...], 0.0)            # (TB, Hp) + (1, Hp)

    # fc2 + tanh.  N = n_actions (tiny); the kernel is HBM-bound so MXU
    # under-utilisation here is irrelevant -- do NOT pad N back to 128.
    a = jnp.dot(h.astype(w2_ref.dtype), w2_ref[...],
                preferred_element_type=jnp.float32)
    a = jnp.tanh(a + b2_ref[...])                    # (TB, A) + (1, A)

    # Scale by action_bound[1]; the clamp is dropped at trace time when the
    # bounds are exactly symmetric (f32 tanh*hi is already inside [-hi, hi]).
    a = a * act_hi
    if apply_clip:
        a = jnp.clip(a, act_lo, act_hi)

    out_ref[...] = a.astype(out_ref.dtype)


def prepare_actor2_params(w1, b1, w2, b2, compute_dtype=jnp.bfloat16):
    """Pad the hidden dim to the 128-lane width and cast weights to the MXU
    dtype.  Call once and reuse across forward calls (weights are tiny and
    stay VMEM-resident inside the kernel, so there is no per-call cost).

    Shapes ([in, out], i.e. already transposed vs torch nn.Linear.weight):
      w1: (F, H)   b1: (H,)   w2: (H, A)   b2: (A,)
    """
    F, H = w1.shape
    A = w2.shape[1]
    Hp = _round_up(H, _LANE)
    # NOTE: do not pad F (the x feature dim) -- that would 4x the dominant HBM
    # read for zero compute benefit.  Zero-padding H is exact: padded hidden
    # columns stay 0 through matmul/ReLU and contribute 0 to fc2.
    w1_p = jnp.zeros((F, Hp), compute_dtype).at[:, :H].set(w1.astype(compute_dtype))
    b1_p = jnp.zeros((1, Hp), jnp.float32).at[0, :H].set(b1.astype(jnp.float32))
    w2_p = jnp.zeros((Hp, A), compute_dtype).at[:H, :].set(w2.astype(compute_dtype))
    b2_p = b2.astype(jnp.float32).reshape(1, A)
    return w1_p, b1_p, w2_p, b2_p


def actor_2_net_forward(x, params, action_bound, *, block_b=1024):
    """x: (B, F) f32.  params: output of prepare_actor2_params()."""
    w1_p, b1_p, w2_p, b2_p = params
    B, F = x.shape
    Fp, Hp = w1_p.shape
    A = w2_p.shape[1]
    assert F == Fp, f"x feature dim {F} != weight in-dim {Fp}"

    # action_bound must be static Python/NumPy scalars; float() raises on
    # traced values which enforces that.
    # TODO(synk): if action_bound ever becomes a traced/per-example array, pass
    # it via SMEM scalars instead of baking it in at trace time.
    act_lo = float(action_bound[0])
    act_hi = float(action_bound[1])
    # Exact-equality symmetry check: anything not exactly (-hi, hi) keeps the clamp.
    apply_clip = not (act_lo == -act_hi)

    # Batch tiling: large tiles amortise per-step overhead; if a big batch
    # would land in a single grid step, split it so both v7x TensorCores get
    # work.  Ragged / undersized tiles are handled by masked DMA (cdiv grid).
    if B >= block_b:
        TB = block_b
        if pl.cdiv(B, TB) == 1:
            TB = max(_SUBLANE, _round_up(block_b // 2, _SUBLANE))
    else:
        TB = _round_up(max(B, 1), _SUBLANE)
    grid_b = pl.cdiv(B, TB)

    kernel = functools.partial(_actor2_kernel, act_lo=act_lo, act_hi=act_hi,
                               apply_clip=apply_clip)

    nbytes = lambda a: a.size * a.dtype.itemsize
    cost = pl.CostEstimate(
        flops=2 * B * (F * Hp + Hp * A),
        transcendentals=B * A,                        # tanh on real lanes only
        bytes_accessed=(nbytes(x) + nbytes(w1_p) + nbytes(b1_p)
                        + nbytes(w2_p) + nbytes(b2_p) + B * A * 4),
    )

    return pl.pallas_call(
        kernel,
        out_shape=jax.ShapeDtypeStruct((B, A), jnp.float32),
        grid_spec=pl.GridSpec(
            grid=(grid_b,),
            in_specs=[
                pl.BlockSpec((TB, F), lambda i: (i, 0)),   # x streamed per tile
                pl.BlockSpec((F, Hp), lambda i: (0, 0)),   # weights stay resident
                pl.BlockSpec((1, Hp), lambda i: (0, 0)),
                pl.BlockSpec((Hp, A), lambda i: (0, 0)),
                pl.BlockSpec((1, A), lambda i: (0, 0)),
            ],
            out_specs=pl.BlockSpec((TB, A), lambda i: (i, 0)),
        ),
        compiler_params=pltpu.CompilerParams(
            dimension_semantics=("parallel",)),            # megacore-shard batch
        cost_estimate=cost,
    )(x, w1_p, b1_p, w2_p, b2_p)


def actor_2_net_forward_xla(x, w1, b1, w2, b2, action_bound):
    """Plain-XLA fallback for tiny batches (B <= ~64) where Pallas launch
    overhead dominates; identical f32 math to the PyTorch module."""
    h = jnp.maximum(jnp.dot(x, w1) + b1, 0.0)
    a = jnp.tanh(jnp.dot(h, w2) + b2) * action_bound[1]
    return jnp.clip(a, action_bound[0], action_bound[1])


def _reference(x, w1, b1, w2, b2, action_bound, compute_dtype=jnp.float32):
    xd, w1d, w2d = (t.astype(compute_dtype) for t in (x, w1, w2))
    h = jnp.maximum(
        jnp.dot(xd, w1d, preferred_element_type=jnp.float32) + b1, 0.0)
    a = jnp.tanh(
        jnp.dot(h.astype(compute_dtype), w2d,
                preferred_element_type=jnp.float32) + b2)
    a = a * action_bound[1]
    return jnp.clip(a, action_bound[0], action_bound[1])


if __name__ == "__main__":
    # Module hyperparameters (consistent with __init__ defaults).
    n_features = 32
    n_hidden = 64
    n_actions = 4
    batch = 2
    action_bound = (-1.0, 1.0)

    key = jax.random.PRNGKey(0)
    kx, k1, kb1, k2, kb2, kx2 = jax.random.split(key, 6)

    # Deterministic synthetic parameters (PyTorch-Linear-like uniform init).
    lim1 = 1.0 / jnp.sqrt(n_features)
    lim2 = 1.0 / jnp.sqrt(n_hidden)
    x = jax.random.normal(kx, (batch, n_features), dtype=jnp.float32)
    w1 = jax.random.uniform(k1, (n_features, n_hidden), jnp.float32, -lim1, lim1)
    b1 = jax.random.uniform(kb1, (n_hidden,), jnp.float32, -lim1, lim1)
    w2 = jax.random.uniform(k2, (n_hidden, n_actions), jnp.float32, -lim2, lim2)
    b2 = jax.random.uniform(kb2, (n_actions,), jnp.float32, -lim2, lim2)

    # Pad/cast the weights once; reuse for every forward call.
    params = prepare_actor2_params(w1, b1, w2, b2)

    # --- small-shape run (module defaults) ---
    out = jax.block_until_ready(actor_2_net_forward(x, params, action_bound))
    assert out.shape == (batch, n_actions)

    ref_bf16 = _reference(x, w1, b1, w2, b2, action_bound,
                          compute_dtype=jnp.bfloat16)
    assert jnp.allclose(out, ref_bf16, atol=1e-3, rtol=1e-3), \
        "mismatch vs bf16-matched reference"
    ref_f32 = _reference(x, w1, b1, w2, b2, action_bound,
                         compute_dtype=jnp.float32)
    assert jnp.allclose(out, ref_f32, atol=3e-2, rtol=0.0), \
        "mismatch vs f32 reference"

    # --- multi-tile / ragged-batch check (exercises masked DMA + grid > 1) ---
    xb = jax.random.normal(kx2, (300, n_features), dtype=jnp.float32)
    outb = jax.block_until_ready(
        actor_2_net_forward(xb, params, action_bound, block_b=128))
    assert outb.shape == (300, n_actions)
    refb = _reference(xb, w1, b1, w2, b2, action_bound,
                      compute_dtype=jnp.bfloat16)
    assert jnp.allclose(outb, refb, atol=1e-3, rtol=1e-3), \
        "mismatch on ragged multi-tile batch"

    print("KERNEL_OK")
</pallas_src>

<mosaic_0001>
module attributes {stable_mosaic.version = 11 : i64} {
  func.func @_actor2_kernel(%arg0: i32, %arg1: memref<8x32xf32, #tpu.memory_space<vmem>>, %arg2: memref<32x128xbf16, #tpu.memory_space<vmem>>, %arg3: memref<1x128xf32, #tpu.memory_space<vmem>>, %arg4: memref<128x4xbf16, #tpu.memory_space<vmem>>, %arg5: memref<1x4xf32, #tpu.memory_space<vmem>>, %arg6: memref<8x4xf32, #tpu.memory_space<vmem>>) attributes {dimension_semantics = [#tpu.dimension_semantics<parallel>], iteration_bounds = array<i64: 1>, scalar_prefetch = 0 : i64, scratch_operands = 0 : i64, tpu.core_type = #tpu.core_type<tc>, window_params = [{transform_indices = @transform_0, window_bounds = array<i64: 8, 32>}, {pipeline_mode = #tpu.pipeline_mode<synchronous>, transform_indices = @transform_1, window_bounds = array<i64: 32, 128>}, {pipeline_mode = #tpu.pipeline_mode<synchronous>, transform_indices = @transform_2, window_bounds = array<i64: 1, 128>}, {pipeline_mode = #tpu.pipeline_mode<synchronous>, transform_indices = @transform_3, window_bounds = array<i64: 128, 4>}, {pipeline_mode = #tpu.pipeline_mode<synchronous>, transform_indices = @transform_4, window_bounds = array<i64: 1, 4>}, {transform_indices = @transform_5, window_bounds = array<i64: 8, 4>}]} {
    %c0 = arith.constant 0 : index
    %c0_0 = arith.constant 0 : index
    %0 = vector.load %arg1[%c0, %c0_0] : memref<8x32xf32, #tpu.memory_space<vmem>>, vector<8x32xf32>
    %1 = arith.truncf %0 : vector<8x32xf32> to vector<8x32xbf16>
    %c0_1 = arith.constant 0 : index
    %c0_2 = arith.constant 0 : index
    %2 = vector.load %arg2[%c0_1, %c0_2] : memref<32x128xbf16, #tpu.memory_space<vmem>>, vector<32x128xbf16>
    %cst = arith.constant dense<0.000000e+00> : vector<8x128xf32>
    %3 = tpu.matmul %1, %2, %cst {dimension_numbers = #tpu.dot_dimension_numbers<[1], [0], [0], [1], [0, 0, 1, 1], [], []>} : vector<8x32xbf16>, vector<32x128xbf16>, vector<8x128xf32> -> vector<8x128xf32>
    %c0_3 = arith.constant 0 : index
    %c0_4 = arith.constant 0 : index
    %4 = vector.load %arg3[%c0_3, %c0_4] : memref<1x128xf32, #tpu.memory_space<vmem>>, vector<1x128xf32>
    %5 = vector.broadcast %4 : vector<1x128xf32> to vector<8x128xf32>
    %6 = arith.addf %3, %5 : vector<8x128xf32>
    %cst_5 = arith.constant 0.000000e+00 : f32
    %7 = vector.broadcast %cst_5 : f32 to vector<8x128xf32>
    %8 = arith.maximumf %6, %7 : vector<8x128xf32>
    %9 = arith.truncf %8 : vector<8x128xf32> to vector<8x128xbf16>
    %c0_6 = arith.constant 0 : index
    %c0_7 = arith.constant 0 : index
    %10 = vector.load %arg4[%c0_6, %c0_7] : memref<128x4xbf16, #tpu.memory_space<vmem>>, vector<128x4xbf16>
    %cst_8 = arith.constant dense<0.000000e+00> : vector<8x4xf32>
    %11 = tpu.matmul %9, %10, %cst_8 {dimension_numbers = #tpu.dot_dimension_numbers<[1], [0], [0], [1], [0, 0, 1, 1], [], []>} : vector<8x128xbf16>, vector<128x4xbf16>, vector<8x4xf32> -> vector<8x4xf32>
    %c0_9 = arith.constant 0 : index
    %c0_10 = arith.constant 0 : index
    %12 = vector.load %arg5[%c0_9, %c0_10] : memref<1x4xf32, #tpu.memory_space<vmem>>, vector<1x4xf32>
    %13 = vector.broadcast %12 : vector<1x4xf32> to vector<8x4xf32>
    %14 = arith.addf %11, %13 : vector<8x4xf32>
    %15 = math.tanh %14 : vector<8x4xf32>
    %cst_11 = arith.constant 1.000000e+00 : f32
    %16 = vector.broadcast %cst_11 : f32 to vector<8x4xf32>
    %17 = arith.mulf %15, %16 : vector<8x4xf32>
    %c0_12 = arith.constant 0 : index
    %c0_13 = arith.constant 0 : index
    %18 = vector.load %arg6[%c0_12, %c0_13] : memref<8x4xf32, #tpu.memory_space<vmem>>, vector<8x4xf32>
    tpu.vector_store %arg6[%c0_12, %c0_13], %17 {strides = array<i32>} : memref<8x4xf32, #tpu.memory_space<vmem>>, vector<8x4xf32>,
    return
  }
  func.func @transform_0(%arg0: i32) -> (i32, i32) {
    %c0_i32 = arith.constant 0 : i32
    %c0_i32_0 = arith.constant 0 : i32
    return %arg0, %c0_i32 : i32, i32
  }
  func.func @transform_1(%arg0: i32) -> (i32, i32) {
    %c0_i32 = arith.constant 0 : i32
    %c0_i32_0 = arith.constant 0 : i32
    %c0_i32_1 = arith.constant 0 : i32
    return %c0_i32, %c0_i32_0 : i32, i32
  }
  func.func @transform_2(%arg0: i32) -> (i32, i32) {
    %c0_i32 = arith.constant 0 : i32
    %c0_i32_0 = arith.constant 0 : i32
    %c0_i32_1 = arith.constant 0 : i32
    return %c0_i32, %c0_i32_0 : i32, i32
  }
  func.func @transform_3(%arg0: i32) -> (i32, i32) {
    %c0_i32 = arith.constant 0 : i32
    %c0_i32_0 = arith.constant 0 : i32
    %c0_i32_1 = arith.constant 0 : i32
    return %c0_i32, %c0_i32_0 : i32, i32
  }
  func.func @transform_4(%arg0: i32) -> (i32, i32) {
    %c0_i32 = arith.constant 0 : i32
    %c0_i32_0 = arith.constant 0 : i32
    %c0_i32_1 = arith.constant 0 : i32
    return %c0_i32, %c0_i32_0 : i32, i32
  }
  func.func @transform_5(%arg0: i32) -> (i32, i32) {
    %c0_i32 = arith.constant 0 : i32
    %c0_i32_0 = arith.constant 0 : i32
    return %arg0, %c0_i32 : i32, i32
  }
}

</mosaic_0001>

<bundles_post_ra>
// kernel: tpu_custom_call.1
= control target key start
LH: loop header
LB: loop body
LE: loop exit
PB: predicated region body
PF: predicated region fallthrough
CT: control target
= control target key end

     0   :  { %10 = vsyncpa [#allocation3], 0  ;;  %v317_v1 = vmov 0.0   ;;  %vm318_vm0 = vmmov 0   ;;  %vm47_vm1 = vcmask 261120   ;;  %vm205_vm2 = vcmask 31744   ;;  %s403_s0 = inlined_call_operand.vmem [shape: f32[2,32], index: 0, kind: input, shape index: {}]   ;;  %s404_s1 = inlined_call_operand.vmem [shape: bf16[32,128], index: 1, kind: input, shape index: {}]   ;;  %s405_s2 = inlined_call_operand.vmem [shape: f32[1,128], index: 2, kind: input, shape index: {}]   ;;  %s406_s3 = inlined_call_operand.vmem [shape: bf16[128,4], index: 3, kind: input, shape index: {}]   ;;  %s407_s4 = inlined_call_operand.vmem [shape: f32[1,4], index: 4, kind: input, shape index: {}]   ;;  %s408_s5 = inlined_call_operand.hbm [shape: f32[2,4], index: 5, kind: output, shape index: {}]  }
   0x1   :  { %v281_v0 = vld [vmem:[%s404_s1] sm:$0xff]   ;;  %248 = vmatprep.subr.bf16.mxu0 %v317_v1  ;;  %256 = vmatprep.subr.bf16.mxu1 %v317_v1  ;;  %v282_v2 = vld [vmem:[%s404_s1 + $0x8] sm:$0xff]   ;;  %v285_v7 = vld [vmem:[%s406_s3 + $0x10] sm:$0xff]  }
   0x2   :  { %249 = vmatpush3.bf16.msra.mxu0 %v281_v0  ;;  %v22_v3 = vld [vmem:[%s403_s0] sm:$0xff]  ;;  %252 = vmatprep.mubr.msk.bf16.mxu0 %vm318_vm0, %v317_v1  ;;  %v284_v6 = vld [vmem:[%s406_s3 + $0x8] sm:$0xff]   ;;  %v286_v8 = vld [vmem:[%s406_s3 + $0x18] sm:$0xff]  }
   0x3   :  { %250 = vmatprep.subr.bf16.mxu0 %v317_v1  ;;  %v283_v4 = vld [vmem:[%s406_s3] sm:$0xff]   ;;  %272 = vmatprep.mubr.msk.bf16.mxu1 %vm318_vm0, %v317_v1  ;;  %v23_v5 = vpack.c.bf16 %v22_v3, %v22_v3  ;;  %v288_v10 = vld [vmem:[%s406_s3 + $0x28] sm:$0xff]   ;;  %v289_v11 = vld [vmem:[%s406_s3 + $0x30] sm:$0xff]  }
   0x4   :  { %257 = vmatpush3.bf16.msra.mxu1 %v283_v4  ;;  %v287_v9 = vld [vmem:[%s406_s3 + $0x20] sm:$0xff]   ;;  %v290_v12 = vld [vmem:[%s406_s3 + $0x38] sm:$0xff]  }
   0x5   :  { %258 = vmatprep.subr.bf16.mxu1 %v317_v1  ;;  %v223_v13 = vld [vmem:[%s405_s2] ss:$0 sm:$0xff] }
   0x6   :  { %251 = vmatpush3.bf16.msra.mxu0 %v282_v2  ;;  %v227_v21 = vld [vmem:[%s407_s4] ss:$0 sm:$0xff] }
   0x8   :  { %259 = vmatpush3.bf16.msra.mxu1 %v284_v6 }
   0x9   :  { %253 = vmatmul.mubr.msk.bf16.vlgmr.msra.gmra.mrb[0].mxu0 %vm47_vm1, %v23_v5  ;;  %260 = vmatprep.subr.bf16.mxu1 %v317_v1 }
   0xc   :  { %261 = vmatpush3.bf16.msra.mxu1 %v285_v7 }
   0xd   :  { %262 = vmatprep.subr.bf16.mxu1 %v317_v1 }
  0x10   :  { %263 = vmatpush3.bf16.msra.mxu1 %v286_v8 }
  0x11   :  { %264 = vmatprep.subr.bf16.mxu1 %v317_v1 }
  0x14   :  { %265 = vmatpush3.bf16.msra.mxu1 %v287_v9 }
  0x15   :  { %266 = vmatprep.subr.bf16.mxu1 %v317_v1 }
  0x18   :  { %267 = vmatpush3.bf16.msra.mxu1 %v288_v10 }
  0x19   :  { %268 = vmatprep.subr.bf16.mxu1 %v317_v1 }
  0x1c   :  { %269 = vmatpush3.bf16.msra.mxu1 %v289_v11 }
  0x1d   :  { %270 = vmatprep.subr.bf16.mxu1 %v317_v1 }
  0x20   :  { %271 = vmatpush3.bf16.msra.mxu1 %v290_v12 }
  0xdc   :  { %v85_v14 = vpop.f32.mrb[0].mxu0 }
  0xdd   :  { %v86_v15 = vadd.f32 %v223_v13, %v85_v14  ;;  %v254_v16 = vpop.f32.mrb[1].mxu0 }
  0xde   :  { %v88_v17 = vpop.f32.mrb[2].mxu0 }
  0xdf   :  { %v91_v18 = vmax.f32 %v86_v15, 0.0  ;;  %v255_v19 = vpop.f32.mrb[3].mxu0 }
  0xe1   :  { %v92_v20 = vpack.c.bf16 %v91_v18, %v91_v18 }
  0xe3   :  { %273 = vmatmul.mubr.bf16.vlgmr.msra.gmra.mrb[0].mxu1 %v92_v20 }
 0x1b6   :  { %v198_v22 = vpop.f32.mrb[0].mxu1 }
 0x1b7   :  { %v199_v23 = vadd.f32 %v227_v21, %v198_v22  ;;  %v274_v24 = vpop.f32.mrb[1].mxu1 }
 0x1b8   :  { %v201_v25 = vpop.f32.mrb[2].mxu1 }
 0x1b9   :  { %291 = vtanh.f32 %v199_v23  ;;  %v275_v26 = vpop.f32.mrb[3].mxu1 }
 0x1c3   :  { %v292_v27 = vpop.eup %291 }
 0x1c4   :  { %206 = vst.msk [vmem:[#allocation2] sm:$0xff] %vm205_vm2, %v292_v27 }
 0x1c5   :  { %211 = vsyncadd [#allocation3], 96  ;;  %s319_s2 = smov [#allocation2]  }
 0x1c6   :  { %s212_s3 = sshll.u32 %s319_s2, 4  ;;  %s213_s3 = int_to_ptr.vmem [resolvable:$true] %s212_s3 }
 0x1c7   :  { %s293_s17 = scalar_lea.vmem %s213_s3, 32  ;;  %s297_s18 = scalar_lea.vmem %s213_s3, 128 }
 0x1c8   :  { %p294_p0 = scmp.ne.s32.totalorder %s213_s3, %s293_s17  ;;  %p298_p1 = scmp.lt.s32.totalorder %s213_s3, %s213_s3 }
 0x1c9   :  { %p299_p2 = scmp.lt.s32.totalorder %s297_s18, %s293_s17 }
 0x1cb   :  { %p300_p3 = por %p299_p2, %p298_p1 }
 0x1cd   :  { %p301_p4 = pnand %p300_p3, %p294_p0 }
 0x1cf   :  { %304 = shalt.err (!%p301_p4)
}
 0x1d0   :  { %s305_s20 = scalar_lea.hbm %s408_s5, 32 }
 0x1d1   :  { %p306_p5 = scmp.ne.s32.totalorder %s408_s5, %s305_s20  ;;  %p309_p6 = scmp.lt.u32.totalorder %s305_s20, %s408_s5 }
 0x1d3   :  { %p311_p7 = pnand %p309_p6, %p306_p5 }
 0x1d5   :  { %314 = shalt.err (!%p311_p7)
}
 0x1d6   :  { %s320_s25 = smov 32   ;;  %s321_s26 = smov 2  }
 0x1d7   :  { %218 = dma.vmem_to_hbm [thread:$0]  %s213_s3, 32, %s408_s5, [#allocation3], %s320_s25, %s320_s25, %s321_s26  }
 0x1d8   :  { %315 = dma.done.wait [#allocation3], 128  }
 0x1d9   :  { %316 = vsyncadd [#allocation3], 4294967168 }
 0x1da   :  { %222 = vsyncpa [#allocation3], 1 }

</bundles_post_ra>
